<compile_context>
chip_gen: v5e
topology: v5e:2x2
jax: 0.10.0
libtpu: 0.0.40
codegen_flags: <defaults>
</compile_context>

<pallas_src>
import jax
import jax.numpy as jnp
from jax.experimental import pallas as pl
from jax.experimental.pallas import tpu as pltpu

O_OUT = 2        # Predictor output_size
O_PAD = 8        # output lanes actually stored to HBM (masked vst, tiny block)
W2_PAD = 128     # W2 lane padding for the MXU (compute only, never stored)


def _round_up(x, m):
    return ((x + m - 1) // m) * m


def sa_kernel(g1_ref, g2_ref, w1_ref, b1_ref, w2_ref, b2_ref, o_ref):
    # TODO(synk): `pre_model` has no definition in the source module; use a
    # deterministic elementwise fusion (g1 * g2) as the feature extractor.
    feats = (g1_ref[...] * g2_ref[...]).astype(jnp.bfloat16)        # (tb, F)

    # Linear(F, 4F) + ReLU -- bf16 operands on the MXU, f32 accumulation.
    h = jnp.dot(feats, w1_ref[...], preferred_element_type=jnp.float32)
    h = jnp.maximum(h + b1_ref[...], 0.0)                           # (tb, H)

    # Dropout(p=0.1): identity at inference time.
    # TODO(synk): add a PRNG mask if this kernel is ever reused for training.

    # Linear(4F, 2) -- W2 lane-padded to 128 for the MXU; only the first
    # O_PAD (=8) columns are written back (cuts HBM writeback 16x).
    out = jnp.dot(h.astype(jnp.bfloat16), w2_ref[...],
                  preferred_element_type=jnp.float32)               # (tb, 128)
    o_ref[...] = (out[:, :o_ref.shape[1]] + b2_ref[...]).astype(o_ref.dtype)


def prepare_params(w1, b1, w2, b2):
    """One-time parameter prep (hoisted out of the per-call hot path)."""
    F, H = w1.shape
    O = w2.shape[1]
    w1b = w1.astype(jnp.bfloat16)                                   # (F, H)
    w2p = jnp.pad(w2, ((0, 0), (0, W2_PAD - O))).astype(jnp.bfloat16)   # (H, 128)
    b1r = b1.reshape(1, H).astype(jnp.float32)                      # (1, H)
    b2p = jnp.pad(b2.reshape(1, -1), ((0, 0), (0, O_PAD - O))
                  ).astype(jnp.float32)                             # (1, 8)
    return (w1b, b1r, w2p, b2p)


@jax.jit
def sa_forward(g1, g2, params):
    """g1, g2: (B, F) features (bf16 or f32).  Returns (B, 2) f32 logits."""
    w1b, b1r, w2p, b2p = params
    B, F = g1.shape
    H = w1b.shape[1]
    in_itemsize = jnp.dtype(g1.dtype).itemsize

    # ---- batch tiling -----------------------------------------------------
    TB_MAX = 1024
    Bp = _round_up(max(B, 8), 8)                 # pad batch to sublane multiple
    if Bp <= 16:
        tb = Bp                                  # too small to split usefully
    else:
        # >=2 grid steps so v7x's two TensorCores both get work.
        tb = min(TB_MAX, _round_up(pl.cdiv(Bp, 2), 8))

    # ---- VMEM guard (v7x: 64 MiB physical; v5e: 16 MiB default scoped) -----
    def vmem_est(t):
        return (2 * 2 * t * F * in_itemsize                       # g1,g2 x2 bufs
                + 2 * t * O_PAD * 4                               # output x2 bufs
                + 2 * ((F * H + H * W2_PAD) * 2 + (H + O_PAD) * 4)  # weights
                + t * H * 4 + t * W2_PAD * 4)                     # f32 intermediates
    VMEM_BUDGET = 40 * 1024 * 1024
    while tb > 8 and vmem_est(tb) > VMEM_BUDGET:
        tb = max(8, _round_up(tb // 2, 8))
    vmem_limit = int(max(32 * 1024 * 1024,
                         min(60 * 1024 * 1024, 2 * vmem_est(tb))))

    grid = (pl.cdiv(Bp, tb),)                    # ragged last block is masked

    pad_b = Bp - B
    g1p = jnp.pad(g1, ((0, pad_b), (0, 0)))
    g2p = jnp.pad(g2, ((0, pad_b), (0, 0)))

    flops = 2 * Bp * F * H + 2 * Bp * H * W2_PAD
    bytes_accessed = ((g1p.size + g2p.size) * in_itemsize
                      + (w1b.size + w2p.size) * 2
                      + (b1r.size + b2p.size) * 4
                      + Bp * O_PAD * 4)

    out_p = pl.pallas_call(
        sa_kernel,
        grid=grid,
        in_specs=[
            pl.BlockSpec((tb, F), lambda i: (i, 0)),       # g1 tile
            pl.BlockSpec((tb, F), lambda i: (i, 0)),       # g2 tile
            pl.BlockSpec((F, H), lambda i: (0, 0)),        # W1 (resident)
            pl.BlockSpec((1, H), lambda i: (0, 0)),        # b1 (resident)
            pl.BlockSpec((H, W2_PAD), lambda i: (0, 0)),   # W2 padded (resident)
            pl.BlockSpec((1, O_PAD), lambda i: (0, 0)),    # b2 padded (resident)
        ],
        out_specs=pl.BlockSpec((tb, O_PAD), lambda i: (i, 0)),
        out_shape=jax.ShapeDtypeStruct((Bp, O_PAD), jnp.float32),
        compiler_params=pltpu.CompilerParams(
            dimension_semantics=("parallel",),             # 2x on v7x dual-TC
            vmem_limit_bytes=vmem_limit),
        cost_estimate=pl.CostEstimate(
            flops=flops, transcendentals=0, bytes_accessed=bytes_accessed),
    )(g1p, g2p, w1b, b1r, w2p, b2p)

    return out_p[:B, :O_OUT]


def init_params(key, fusion_feature_size):
    """Deterministic PyTorch-style (uniform +/- 1/sqrt(fan_in)) init."""
    F = fusion_feature_size
    H = 4 * F
    O = O_OUT
    k1, k2, k3, k4 = jax.random.split(key, 4)
    lim1 = 1.0 / jnp.sqrt(F)
    lim2 = 1.0 / jnp.sqrt(H)
    w1 = jax.random.uniform(k1, (F, H), jnp.float32, -lim1, lim1)
    b1 = jax.random.uniform(k2, (H,), jnp.float32, -lim1, lim1)
    w2 = jax.random.uniform(k3, (H, O), jnp.float32, -lim2, lim2)
    b2 = jax.random.uniform(k4, (1, O), jnp.float32, -lim2, lim2)
    return w1, b1, w2, b2


if __name__ == "__main__":
    B = 2
    fusion_feature_size = 32     # -> hidden = 128, output = 2

    key = jax.random.PRNGKey(0)
    kg1, kg2, kp = jax.random.split(key, 3)
    # Features consumed in bf16 (cast upstream once): halves input HBM traffic;
    # the MXU operands are bf16 regardless.
    g1 = jax.random.normal(kg1, (B, fusion_feature_size),
                           jnp.float32).astype(jnp.bfloat16)
    g2 = jax.random.normal(kg2, (B, fusion_feature_size),
                           jnp.float32).astype(jnp.bfloat16)
    w1, b1, w2, b2 = init_params(kp, fusion_feature_size)

    params = prepare_params(w1, b1, w2, b2)   # hoisted one-time prep
    out = sa_forward(g1, g2, params)
    jax.block_until_ready(out)

    # Pure-JAX reference with the same bf16-at-MXU-boundary convention.
    feats = (g1 * g2).astype(jnp.bfloat16)
    h_ref = jnp.dot(feats, w1.astype(jnp.bfloat16),
                    preferred_element_type=jnp.float32) + b1
    h_ref = jnp.maximum(h_ref, 0.0)
    ref = jnp.dot(h_ref.astype(jnp.bfloat16), w2.astype(jnp.bfloat16),
                  preferred_element_type=jnp.float32) + b2

    assert out.shape == (B, 2)
    assert jnp.allclose(out, ref, atol=2e-2, rtol=2e-2)

    print("KERNEL_OK")
</pallas_src>

<mosaic_0001>
module attributes {stable_mosaic.version = 11 : i64} {
  func.func @sa_kernel(%arg0: i32, %arg1: memref<8x32xbf16, #tpu.memory_space<vmem>>, %arg2: memref<8x32xbf16, #tpu.memory_space<vmem>>, %arg3: memref<32x128xbf16, #tpu.memory_space<vmem>>, %arg4: memref<1x128xf32, #tpu.memory_space<vmem>>, %arg5: memref<128x128xbf16, #tpu.memory_space<vmem>>, %arg6: memref<1x8xf32, #tpu.memory_space<vmem>>, %arg7: memref<8x8xf32, #tpu.memory_space<vmem>>) attributes {dimension_semantics = [#tpu.dimension_semantics<parallel>], iteration_bounds = array<i64: 1>, scalar_prefetch = 0 : i64, scratch_operands = 0 : i64, tpu.core_type = #tpu.core_type<tc>, window_params = [{transform_indices = @transform_0, window_bounds = array<i64: 8, 32>}, {transform_indices = @transform_1, window_bounds = array<i64: 8, 32>}, {pipeline_mode = #tpu.pipeline_mode<synchronous>, transform_indices = @transform_2, window_bounds = array<i64: 32, 128>}, {pipeline_mode = #tpu.pipeline_mode<synchronous>, transform_indices = @transform_3, window_bounds = array<i64: 1, 128>}, {pipeline_mode = #tpu.pipeline_mode<synchronous>, transform_indices = @transform_4, window_bounds = array<i64: 128, 128>}, {pipeline_mode = #tpu.pipeline_mode<synchronous>, transform_indices = @transform_5, window_bounds = array<i64: 1, 8>}, {transform_indices = @transform_6, window_bounds = array<i64: 8, 8>}]} {
    %c0 = arith.constant 0 : index
    %c0_0 = arith.constant 0 : index
    %0 = vector.load %arg1[%c0, %c0_0] : memref<8x32xbf16, #tpu.memory_space<vmem>>, vector<8x32xbf16>
    %c0_1 = arith.constant 0 : index
    %c0_2 = arith.constant 0 : index
    %1 = vector.load %arg2[%c0_1, %c0_2] : memref<8x32xbf16, #tpu.memory_space<vmem>>, vector<8x32xbf16>
    %2 = arith.mulf %0, %1 : vector<8x32xbf16>
    %c0_3 = arith.constant 0 : index
    %c0_4 = arith.constant 0 : index
    %3 = vector.load %arg3[%c0_3, %c0_4] : memref<32x128xbf16, #tpu.memory_space<vmem>>, vector<32x128xbf16>
    %cst = arith.constant dense<0.000000e+00> : vector<8x128xf32>
    %4 = tpu.matmul %2, %3, %cst {dimension_numbers = #tpu.dot_dimension_numbers<[1], [0], [0], [1], [0, 0, 1, 1], [], []>} : vector<8x32xbf16>, vector<32x128xbf16>, vector<8x128xf32> -> vector<8x128xf32>
    %c0_5 = arith.constant 0 : index
    %c0_6 = arith.constant 0 : index
    %5 = vector.load %arg4[%c0_5, %c0_6] : memref<1x128xf32, #tpu.memory_space<vmem>>, vector<1x128xf32>
    %6 = vector.broadcast %5 : vector<1x128xf32> to vector<8x128xf32>
    %7 = arith.addf %4, %6 : vector<8x128xf32>
    %cst_7 = arith.constant 0.000000e+00 : f32
    %8 = vector.broadcast %cst_7 : f32 to vector<8x128xf32>
    %9 = arith.maximumf %7, %8 : vector<8x128xf32>
    %10 = arith.truncf %9 : vector<8x128xf32> to vector<8x128xbf16>
    %c0_8 = arith.constant 0 : index
    %c0_9 = arith.constant 0 : index
    %11 = vector.load %arg5[%c0_8, %c0_9] : memref<128x128xbf16, #tpu.memory_space<vmem>>, vector<128x128xbf16>
    %cst_10 = arith.constant dense<0.000000e+00> : vector<8x128xf32>
    %12 = tpu.matmul %10, %11, %cst_10 {dimension_numbers = #tpu.dot_dimension_numbers<[1], [0], [0], [1], [0, 0, 1, 1], [], []>} : vector<8x128xbf16>, vector<128x128xbf16>, vector<8x128xf32> -> vector<8x128xf32>
    %13 = vector.extract_strided_slice %12 {offsets = [0, 0], sizes = [8, 8], strides = [1, 1]} : vector<8x128xf32> to vector<8x8xf32>
    %c0_11 = arith.constant 0 : index
    %c0_12 = arith.constant 0 : index
    %14 = vector.load %arg6[%c0_11, %c0_12] : memref<1x8xf32, #tpu.memory_space<vmem>>, vector<1x8xf32>
    %15 = vector.broadcast %14 : vector<1x8xf32> to vector<8x8xf32>
    %16 = arith.addf %13, %15 : vector<8x8xf32>
    %c0_13 = arith.constant 0 : index
    %c0_14 = arith.constant 0 : index
    %17 = vector.load %arg7[%c0_13, %c0_14] : memref<8x8xf32, #tpu.memory_space<vmem>>, vector<8x8xf32>
    tpu.vector_store %arg7[%c0_13, %c0_14], %16 {strides = array<i32>} : memref<8x8xf32, #tpu.memory_space<vmem>>, vector<8x8xf32>,
    return
  }
  func.func @transform_0(%arg0: i32) -> (i32, i32) {
    %c0_i32 = arith.constant 0 : i32
    %c0_i32_0 = arith.constant 0 : i32
    return %arg0, %c0_i32 : i32, i32
  }
  func.func @transform_1(%arg0: i32) -> (i32, i32) {
    %c0_i32 = arith.constant 0 : i32
    %c0_i32_0 = arith.constant 0 : i32
    return %arg0, %c0_i32 : i32, i32
  }
  func.func @transform_2(%arg0: i32) -> (i32, i32) {
    %c0_i32 = arith.constant 0 : i32
    %c0_i32_0 = arith.constant 0 : i32
    %c0_i32_1 = arith.constant 0 : i32
    return %c0_i32, %c0_i32_0 : i32, i32
  }
  func.func @transform_3(%arg0: i32) -> (i32, i32) {
    %c0_i32 = arith.constant 0 : i32
    %c0_i32_0 = arith.constant 0 : i32
    %c0_i32_1 = arith.constant 0 : i32
    return %c0_i32, %c0_i32_0 : i32, i32
  }
  func.func @transform_4(%arg0: i32) -> (i32, i32) {
    %c0_i32 = arith.constant 0 : i32
    %c0_i32_0 = arith.constant 0 : i32
    %c0_i32_1 = arith.constant 0 : i32
    return %c0_i32, %c0_i32_0 : i32, i32
  }
  func.func @transform_5(%arg0: i32) -> (i32, i32) {
    %c0_i32 = arith.constant 0 : i32
    %c0_i32_0 = arith.constant 0 : i32
    %c0_i32_1 = arith.constant 0 : i32
    return %c0_i32, %c0_i32_0 : i32, i32
  }
  func.func @transform_6(%arg0: i32) -> (i32, i32) {
    %c0_i32 = arith.constant 0 : i32
    %c0_i32_0 = arith.constant 0 : i32
    return %arg0, %c0_i32 : i32, i32
  }
}

</mosaic_0001>

<bundles_post_ra>
// kernel: sa_forward.1
= control target key start
LH: loop header
LB: loop body
LE: loop exit
PB: predicated region body
PF: predicated region fallthrough
CT: control target
= control target key end

     0   :  { %11 = vsyncpa [#allocation3], 0  ;;  %s360_s0 = inlined_call_operand.vmem [shape: bf16[8,32], index: 0, kind: input, shape index: {}]   ;;  %s361_s1 = inlined_call_operand.vmem [shape: bf16[8,32], index: 1, kind: input, shape index: {}]   ;;  %s362_s2 = inlined_call_operand.hbm [shape: bf16[32,128], index: 2, kind: input, shape index: {}]   ;;  %s363_s3 = inlined_call_operand.vmem [shape: f32[1,128], index: 3, kind: input, shape index: {}]   ;;  %s364_s4 = inlined_call_operand.hbm [shape: bf16[128,128], index: 4, kind: input, shape index: {}]   ;;  %s365_s5 = inlined_call_operand.vmem [shape: f32[1,8], index: 5, kind: input, shape index: {}]   ;;  %s366_s6 = inlined_call_operand.vmem [shape: f32[8,8], index: 6, kind: output, shape index: {}]  }
   0x1   :  { %s21_s23 = sshll.u32 %s362_s2, 4  ;;  %s22_s23 = int_to_ptr.hbm [resolvable:$true] %s21_s23 }
   0x2   :  { %12 = vsyncpa [#allocation5], 0  ;;  %s300_s24 = smov [#allocation2]   ;;  %s36_s28 = sshll.u32 %s364_s4, 4  ;;  %s37_s28 = int_to_ptr.hbm [resolvable:$true] %s36_s28 }
   0x3   :  { %s23_s25 = sshll.u32 %s300_s24, 4  ;;  %s301_s29 = smov 64   ;;  %s24_s25 = int_to_ptr.vmem [resolvable:$true] %s23_s25 }
   0x4   :  { %s302_s30 = smov 4   ;;  %s303_s7 = smov [#allocation4]  }
   0x5   :  { %29 = dma.hbm_to_vmem [thread:$0]  %s22_s23, 256, %s24_s25, [#allocation3], %s301_s29, %s301_s29, %s302_s30  }
   0x6   :  { %s38_s8 = sshll.u32 %s303_s7, 4  ;;  %s39_s8 = int_to_ptr.vmem [resolvable:$true] %s38_s8 }
   0x7   :  { %44 = dma.hbm_to_vmem [thread:$0]  %s37_s28, 1024, %s39_s8, [#allocation5], %s301_s29, %s301_s29, %s302_s30  }
   0x8   :  { %296 = dma.done.wait [#allocation3], 256  }
   0x9   :  { %297 = vsyncadd [#allocation3], 4294967040 }
   0xa   :  { %298 = dma.done.wait [#allocation5], 1024  }
   0xb   :  { %299 = vsyncadd [#allocation5], 4294966272  ;;  %v233_v0 = vld [vmem:[#allocation2 + $0x8] sm:$0xff]  ;;  %v56_v1 = vld [vmem:[%s360_s0] sm:$0xf]  ;;  %vm82_vm0 = vcmask 261120  }
   0xc   :  { %v57_v2 = vld [vmem:[%s361_s1] sm:$0xf]  ;;  %v58_v3 = vunpack.c.l.bf16 %v56_v1  ;;  %v241_v4 = vld [vmem:[#allocation4 + $0x38] sm:$0xff]  ;;  %92 = vmatpush.bf16.msra.mxu0 %v233_v0  ;;  %v239_v10 = vld [vmem:[#allocation4 + $0x28] sm:$0xff]  ;;  %vm183_vm1 = vcmask 64512  }
   0xd   :  { %v232_v5 = vld [vmem:[#allocation2] sm:$0xff]  ;;  %v59_v6 = vunpack.c.l.bf16 %v57_v2  ;;  %165 = vmatpush.bf16.msra.mxu1 %v241_v4  ;;  %v238_v11 = vld [vmem:[#allocation4 + $0x20] sm:$0xff]  ;;  %v237_v12 = vld [vmem:[#allocation4 + $0x18] sm:$0xff] }
   0xe   :  { %v240_v7 = vld [vmem:[#allocation4 + $0x30] sm:$0xff]  ;;  %v235_v14 = vld [vmem:[#allocation4 + $0x8] sm:$0xff]  ;;  %v234_v15 = vld [vmem:[#allocation4] sm:$0xff] }
   0xf   :  { %v60_v8 = vmul.f32 %v59_v6, %v58_v3  ;;  %v236_v13 = vld [vmem:[#allocation4 + $0x10] sm:$0xff] }
  0x10   :  { %93 = vmatpush.bf16.msra.mxu0 %v232_v5  ;;  %v246_v16 = vld [vmem:[%s363_s3] ss:$0 sm:$0xff] }
  0x11   :  { %v61_v9 = vpack.c.bf16 %v60_v8, %v60_v8  ;;  %166 = vmatpush.bf16.msra.mxu1 %v240_v7  ;;  %v247_v22 = vld [vmem:[%s365_s5] ss:$0 sm:$0xff] }
  0x13   :  { %199 = vmatmul.msk.bf16.vlgmr.msra.gmra.mxu0 %vm82_vm0, %v61_v9 }
  0x15   :  { %167 = vmatpush.bf16.msra.mxu1 %v239_v10 }
  0x19   :  { %168 = vmatpush.bf16.msra.mxu1 %v238_v11 }
  0x1d   :  { %169 = vmatpush.bf16.msra.mxu1 %v237_v12 }
  0x21   :  { %170 = vmatpush.bf16.msra.mxu1 %v236_v13 }
  0x25   :  { %171 = vmatpush.bf16.msra.mxu1 %v235_v14 }
  0x29   :  { %172 = vmatpush.bf16.msra.mxu1 %v234_v15 }
  0x90   :  { %v95_v17 = vpop.f32.mrf.mxu0 }
  0x91   :  { %v96_v18 = vadd.f32 %v246_v16, %v95_v17 }
  0x93   :  { %v99_v19 = vmax.f32 %v96_v18, 0.0 }
  0x95   :  { %v100_v20 = vpack.c.bf16 %v99_v19, %v99_v19 }
  0x97   :  { %173 = vmatmul.bf16.vlgmr.msra.gmra.mxu1 %v100_v20 }
  0x98   :  { %v97_v21 = vpop.f32.mrf.mxu0 }
 0x114   :  { %v174_v23 = vpop.f32.mrf.mxu1 }
 0x115   :  { %v182_v24 = vadd.f32 %v247_v22, %v174_v23 }
 0x117   :  { %184 = vst.msk [vmem:[%s366_s6] sm:$0xff] %vm183_vm1, %v182_v24 }
 0x11c   :  { %v176_v25 = vpop.f32.mrf.mxu1 }
 0x11d   :  { %189 = vsyncpa [#allocation3], 1 }
 0x11e   :  { %190 = vsyncpa [#allocation5], 1 }

</bundles_post_ra>
